<compile_context>
chip_gen: v6e
topology: v6e:2x2x1
jax: 0.10.0
libtpu: 0.0.40
codegen_flags: <defaults>
</compile_context>

<pallas_src>
import functools

import jax
import jax.numpy as jnp
from jax import lax
from jax.experimental import pallas as pl
from jax.experimental.pallas import tpu as pltpu


def bottleneck_kernel(x_ref, w1_ref, wb_ref, w3_ref, b1_ref, b2_ref, b3_ref,
                      o_ref, *, H):
    # x_ref : (N*H, W*Cin)        bf16, lane-dense (W*Cin == 128)
    # w1_ref: (W*Cin, W*Cmid)     bf16 block-diag 1x1 conv weight (BN1 scale folded)
    # wb_ref: (3*W*Cmid, W*Cmid)  bf16 stacked banded 3x3 conv weight (BN2 scale folded)
    # w3_ref: (W*Cmid, W*Cout)    bf16 block-diag 1x1 expansion weight (BN3 scale folded)
    # b*_ref: (1, W*C)            f32 folded BN biases, tiled over W
    # o_ref : (N*H, W*Cout)       f32, lane-dense (W*Cout == 128)
    xb = x_ref[...]                                               # (NH, WCin) bf16

    # ---- conv1 (1x1) + bn1 bias + relu ----
    h1 = jnp.dot(xb, w1_ref[...], preferred_element_type=jnp.float32)
    h1 = jnp.maximum(h1 + b1_ref[...], 0.0)                       # (NH, WCmid) f32

    # ---- conv2 (3x3, stride=1, pad=1) + bn2 bias + relu ----
    # Horizontal (kx) taps live inside the banded weight; vertical (ky) taps come from
    # sublane rolls, with a row mask providing the zero padding at h==0 / h==H-1
    # (this also kills wrap-around between images of the merged batch).
    nh = h1.shape[0]
    row = lax.broadcasted_iota(jnp.int32, h1.shape, 0)
    if (H & (H - 1)) == 0:
        hrow = row & (H - 1)                                      # row index within image
    else:
        hrow = row % H
    up = jnp.where(hrow != 0, pltpu.roll(h1, shift=1, axis=0), 0.0)           # row h-1
    dn = jnp.where(hrow != H - 1, pltpu.roll(h1, shift=nh - 1, axis=0), 0.0)  # row h+1
    cat = jnp.concatenate([up, h1, dn], axis=-1).astype(jnp.bfloat16)  # (NH, 3*WCmid)
    h2 = jnp.dot(cat, wb_ref[...], preferred_element_type=jnp.float32)
    h2 = jnp.maximum(h2 + b2_ref[...], 0.0)                       # (NH, WCmid) f32

    # ---- conv3 (1x1, expansion) + bn3 bias + residual + relu ----
    h3 = jnp.dot(h2.astype(jnp.bfloat16), w3_ref[...],
                 preferred_element_type=jnp.float32)
    o_ref[...] = jnp.maximum(h3 + b3_ref[...] + xb.astype(jnp.float32), 0.0)


@jax.jit
def bottleneck_block_nhwc(x_nhwc, w1_bd, wb_st, w3_bd, b1, b2, b3):
    N, H, W, Cin = x_nhwc.shape
    WCin = W * Cin
    WCmid = w1_bd.shape[1]
    WCout = w3_bd.shape[1]
    Cout = WCout // W
    NH = N * H

    # Lane-dense bf16 input: batch folded into M, last dim = W*Cin = 128.
    x2 = x_nhwc.astype(jnp.bfloat16).reshape(NH, WCin)

    flops = 2 * NH * (WCin * WCmid + 3 * WCmid * WCmid + WCmid * WCout)
    bytes_accessed = (x2.size * 2
                      + (w1_bd.size + wb_st.size + w3_bd.size) * 2
                      + (b1.size + b2.size + b3.size) * 4
                      + NH * WCout * 4)

    out = pl.pallas_call(
        functools.partial(bottleneck_kernel, H=H),
        out_shape=jax.ShapeDtypeStruct((NH, WCout), jnp.float32),
        # No grid: a single step, all operands resident in VMEM (few KiB total).
        in_specs=[pl.BlockSpec(memory_space=pltpu.MemorySpace.VMEM)
                  for _ in range(7)],
        out_specs=pl.BlockSpec(memory_space=pltpu.MemorySpace.VMEM),
        cost_estimate=pl.CostEstimate(flops=flops, transcendentals=0,
                                      bytes_accessed=bytes_accessed),
    )(x2, w1_bd, wb_st, w3_bd, b1, b2, b3)

    return out.reshape(N, H, W, Cout)


def fold_bn(gamma, beta, mean, var, eps=1e-5):
    scale = gamma / jnp.sqrt(var + eps)
    bias = beta - mean * scale
    return scale.astype(jnp.float32), bias.astype(jnp.float32)


def prepare_block_params(conv1_w, conv2_w, conv3_w, bn1, bn2, bn3, H, W):
    """Fold eval-mode BN into the conv weights and build the lane-dense operands
    (block-diagonal / stacked-banded matrices) consumed by the kernel.

    conv*_w use the PyTorch layout (out, in, kh, kw); bn* = (gamma, beta, mean, var).
    Returns (kernel_params, ref_params)."""
    Cmid, Cin = conv1_w.shape[0], conv1_w.shape[1]
    Cout = conv3_w.shape[0]

    # Gate: the kron/banded construction is only sensible at small W*C (toy shapes);
    # at real ResNet sizes it blows up VMEM and multiplies MXU FLOPs by ~W.
    assert W * Cin <= 512 and W * Cmid <= 512 and W * Cout <= 512, \
        "kron/banded construction gated to small W*C"

    s1, b1 = fold_bn(*bn1)
    s2, b2 = fold_bn(*bn2)
    s3, b3 = fold_bn(*bn3)

    # Matmul layout (in, out); BN scale folded into the output channel; bf16 MXU operands.
    w1 = (jnp.transpose(conv1_w[:, :, 0, 0], (1, 0)) * s1[None, :]).astype(jnp.bfloat16)
    w2 = (jnp.transpose(conv2_w, (2, 3, 1, 0)).reshape(9, Cmid, Cmid)
          * s2[None, None, :]).astype(jnp.bfloat16)              # taps, row-major (ky, kx)
    w3 = (jnp.transpose(conv3_w[:, :, 0, 0], (1, 0)) * s3[None, :]).astype(jnp.bfloat16)

    eye_w = jnp.eye(W, dtype=jnp.float32)
    w1_bd = jnp.kron(eye_w, w1.astype(jnp.float32)).astype(jnp.bfloat16)  # (W*Cin, W*Cmid)
    w3_bd = jnp.kron(eye_w, w3.astype(jnp.float32)).astype(jnp.bfloat16)  # (W*Cmid, W*Cout)
    # One banded matrix per vertical tap ky (horizontal kx taps folded into K), stacked
    # along K so conv2 is a single (NH, 3*W*Cmid) x (3*W*Cmid, W*Cmid) matmul against
    # concat([row-1, row, row+1]) built in the kernel.
    wb_st = jnp.concatenate([
        sum(jnp.kron(jnp.eye(W, k=1 - kx, dtype=jnp.float32),
                     w2[ky * 3 + kx].astype(jnp.float32)) for kx in range(3))
        for ky in range(3)], axis=0).astype(jnp.bfloat16)        # (3*W*Cmid, W*Cmid)

    b1_t = jnp.tile(b1, W).reshape(1, W * Cmid)
    b2_t = jnp.tile(b2, W).reshape(1, W * Cmid)
    b3_t = jnp.tile(b3, W).reshape(1, W * Cout)

    kernel_params = (w1_bd, wb_st, w3_bd, b1_t, b2_t, b3_t)
    ref_params = (w1, w2, w3, b1, b2, b3)
    return kernel_params, ref_params


def reference_block_nhwc(x_nhwc, w1, w2, w3, b1, b2, b3):
    """Plain-JAX reference with the same precision policy as the kernel:
    bf16-rounded input, bf16 matmul operands, f32 accumulation, f32 residual."""
    f32 = jnp.float32
    xb = x_nhwc.astype(jnp.bfloat16)
    N, H, W, _ = x_nhwc.shape
    Cmid = w1.shape[1]

    h = jnp.einsum("nhwc,cd->nhwd", xb, w1, preferred_element_type=f32)
    h = jnp.maximum(h + b1, 0.0)
    hp = jnp.pad(h.astype(jnp.bfloat16), ((0, 0), (1, 1), (1, 1), (0, 0)))
    acc = jnp.zeros((N, H, W, Cmid), f32)
    for ky in range(3):
        for kx in range(3):
            acc = acc + jnp.einsum("nhwc,cd->nhwd",
                                   hp[:, ky:ky + H, kx:kx + W, :], w2[ky * 3 + kx],
                                   preferred_element_type=f32)
    h2 = jnp.maximum(acc + b2, 0.0)
    h3 = jnp.einsum("nhwc,cd->nhwd", h2.astype(jnp.bfloat16), w3,
                    preferred_element_type=f32)
    return jnp.maximum(h3 + b3 + xb.astype(f32), 0.0)


if __name__ == "__main__":
    # Shapes: in_channels=16, intermediate_channels=4, expansion=4 -> out=16,
    # stride=1, identity_downsample=None. Input NCHW = (2, 16, 8, 8).
    N, Cin, H, W = 2, 16, 8, 8
    Cmid = 4
    Cout = 4 * Cmid
    assert Cout == Cin                         # required for the raw residual add
    assert W * Cin == 128 and W * Cout == 128  # lane-dense I/O layout

    key = jax.random.PRNGKey(0)
    ks = jax.random.split(key, 8)

    x_nchw = jax.random.normal(ks[0], (N, Cin, H, W), jnp.float32)

    # PyTorch conv weight layouts (out, in, kh, kw).
    conv1_w = jax.random.normal(ks[1], (Cmid, Cin, 1, 1), jnp.float32) * 0.1
    conv2_w = jax.random.normal(ks[2], (Cmid, Cmid, 3, 3), jnp.float32) * 0.1
    conv3_w = jax.random.normal(ks[3], (Cout, Cmid, 1, 1), jnp.float32) * 0.1

    def bn_params(k, c):
        k1, k2, k3, k4 = jax.random.split(k, 4)
        gamma = 1.0 + 0.1 * jax.random.normal(k1, (c,), jnp.float32)
        beta = 0.1 * jax.random.normal(k2, (c,), jnp.float32)
        mean = 0.1 * jax.random.normal(k3, (c,), jnp.float32)
        var = 1.0 + 0.1 * jax.random.uniform(k4, (c,), jnp.float32)
        return gamma, beta, mean, var

    bn1 = bn_params(ks[4], Cmid)
    bn2 = bn_params(ks[5], Cmid)
    bn3 = bn_params(ks[6], Cout)

    kernel_params, ref_params = prepare_block_params(
        conv1_w, conv2_w, conv3_w, bn1, bn2, bn3, H, W)

    # NCHW -> NHWC once at the block boundary (in a full network this layout change
    # belongs to the producer/consumer and is not paid per block).
    x_nhwc = jnp.transpose(x_nchw, (0, 2, 3, 1))

    out_nhwc = bottleneck_block_nhwc(x_nhwc, *kernel_params)
    out_nhwc = jax.block_until_ready(out_nhwc)

    ref_nhwc = reference_block_nhwc(x_nhwc, *ref_params)
    assert out_nhwc.shape == (N, H, W, Cout)
    assert jnp.allclose(out_nhwc, ref_nhwc, atol=1e-3, rtol=1e-3), "mismatch vs reference"

    print("KERNEL_OK")
</pallas_src>

<mosaic_0001>
module attributes {stable_mosaic.version = 11 : i64} {
  func.func @bottleneck_kernel(%arg0: memref<16x128xbf16, #tpu.memory_space<vmem>>, %arg1: memref<128x32xbf16, #tpu.memory_space<vmem>>, %arg2: memref<96x32xbf16, #tpu.memory_space<vmem>>, %arg3: memref<32x128xbf16, #tpu.memory_space<vmem>>, %arg4: memref<1x32xf32, #tpu.memory_space<vmem>>, %arg5: memref<1x32xf32, #tpu.memory_space<vmem>>, %arg6: memref<1x128xf32, #tpu.memory_space<vmem>>, %arg7: memref<16x128xf32, #tpu.memory_space<vmem>>) attributes {dimension_semantics = [], scalar_prefetch = 0 : i64, scratch_operands = 0 : i64, tpu.core_type = #tpu.core_type<tc>} {
    %c0 = arith.constant 0 : index
    %c0_0 = arith.constant 0 : index
    %0 = vector.load %arg0[%c0, %c0_0] : memref<16x128xbf16, #tpu.memory_space<vmem>>, vector<16x128xbf16>
    %c0_1 = arith.constant 0 : index
    %c0_2 = arith.constant 0 : index
    %1 = vector.load %arg1[%c0_1, %c0_2] : memref<128x32xbf16, #tpu.memory_space<vmem>>, vector<128x32xbf16>
    %cst = arith.constant dense<0.000000e+00> : vector<16x32xf32>
    %2 = tpu.matmul %0, %1, %cst {dimension_numbers = #tpu.dot_dimension_numbers<[1], [0], [0], [1], [0, 0, 1, 1], [], []>} : vector<16x128xbf16>, vector<128x32xbf16>, vector<16x32xf32> -> vector<16x32xf32>
    %c0_3 = arith.constant 0 : index
    %c0_4 = arith.constant 0 : index
    %3 = vector.load %arg4[%c0_3, %c0_4] : memref<1x32xf32, #tpu.memory_space<vmem>>, vector<1x32xf32>
    %4 = vector.broadcast %3 : vector<1x32xf32> to vector<16x32xf32>
    %5 = arith.addf %2, %4 : vector<16x32xf32>
    %cst_5 = arith.constant 0.000000e+00 : f32
    %6 = vector.broadcast %cst_5 : f32 to vector<16x32xf32>
    %7 = arith.maximumf %5, %6 : vector<16x32xf32>
    %8 = tpu.iota {dimensions = array<i32: 0>} : vector<16x32xi32>
    %c7_i32 = arith.constant 7 : i32
    %9 = vector.broadcast %c7_i32 : i32 to vector<16x32xi32>
    %10 = arith.andi %8, %9 : vector<16x32xi32>
    %c0_i32 = arith.constant 0 : i32
    %11 = vector.broadcast %c0_i32 : i32 to vector<16x32xi32>
    %12 = arith.cmpi ne, %10, %11 : vector<16x32xi32>
    %c1_i32 = arith.constant 1 : i32
    %13 = tpu.dynamic_rotate %7 by %c1_i32 dim 0 : vector<16x32xf32>, i32 -> vector<16x32xf32>
    %cst_6 = arith.constant 0.000000e+00 : f32
    %14 = vector.broadcast %cst_6 : f32 to vector<16x32xf32>
    %15 = arith.select %12, %13, %14 : vector<16x32xi1>, vector<16x32xf32>
    %c7_i32_7 = arith.constant 7 : i32
    %16 = vector.broadcast %c7_i32_7 : i32 to vector<16x32xi32>
    %17 = arith.cmpi ne, %10, %16 : vector<16x32xi32>
    %c15_i32 = arith.constant 15 : i32
    %18 = tpu.dynamic_rotate %7 by %c15_i32 dim 0 : vector<16x32xf32>, i32 -> vector<16x32xf32>
    %cst_8 = arith.constant 0.000000e+00 : f32
    %19 = vector.broadcast %cst_8 : f32 to vector<16x32xf32>
    %20 = arith.select %17, %18, %19 : vector<16x32xi1>, vector<16x32xf32>
    %21 = tpu.concatenate %15, %7, %20 in 1 : vector<16x32xf32>, vector<16x32xf32>, vector<16x32xf32> -> vector<16x96xf32>
    %22 = arith.truncf %21 : vector<16x96xf32> to vector<16x96xbf16>
    %c0_9 = arith.constant 0 : index
    %c0_10 = arith.constant 0 : index
    %23 = vector.load %arg2[%c0_9, %c0_10] : memref<96x32xbf16, #tpu.memory_space<vmem>>, vector<96x32xbf16>
    %cst_11 = arith.constant dense<0.000000e+00> : vector<16x32xf32>
    %24 = tpu.matmul %22, %23, %cst_11 {dimension_numbers = #tpu.dot_dimension_numbers<[1], [0], [0], [1], [0, 0, 1, 1], [], []>} : vector<16x96xbf16>, vector<96x32xbf16>, vector<16x32xf32> -> vector<16x32xf32>
    %c0_12 = arith.constant 0 : index
    %c0_13 = arith.constant 0 : index
    %25 = vector.load %arg5[%c0_12, %c0_13] : memref<1x32xf32, #tpu.memory_space<vmem>>, vector<1x32xf32>
    %26 = vector.broadcast %25 : vector<1x32xf32> to vector<16x32xf32>
    %27 = arith.addf %24, %26 : vector<16x32xf32>
    %cst_14 = arith.constant 0.000000e+00 : f32
    %28 = vector.broadcast %cst_14 : f32 to vector<16x32xf32>
    %29 = arith.maximumf %27, %28 : vector<16x32xf32>
    %30 = arith.truncf %29 : vector<16x32xf32> to vector<16x32xbf16>
    %c0_15 = arith.constant 0 : index
    %c0_16 = arith.constant 0 : index
    %31 = vector.load %arg3[%c0_15, %c0_16] : memref<32x128xbf16, #tpu.memory_space<vmem>>, vector<32x128xbf16>
    %cst_17 = arith.constant dense<0.000000e+00> : vector<16x128xf32>
    %32 = tpu.matmul %30, %31, %cst_17 {dimension_numbers = #tpu.dot_dimension_numbers<[1], [0], [0], [1], [0, 0, 1, 1], [], []>} : vector<16x32xbf16>, vector<32x128xbf16>, vector<16x128xf32> -> vector<16x128xf32>
    %c0_18 = arith.constant 0 : index
    %c0_19 = arith.constant 0 : index
    %33 = vector.load %arg6[%c0_18, %c0_19] : memref<1x128xf32, #tpu.memory_space<vmem>>, vector<1x128xf32>
    %34 = vector.broadcast %33 : vector<1x128xf32> to vector<16x128xf32>
    %35 = arith.addf %32, %34 : vector<16x128xf32>
    %36 = arith.extf %0 : vector<16x128xbf16> to vector<16x128xf32>
    %37 = arith.addf %35, %36 : vector<16x128xf32>
    %cst_20 = arith.constant 0.000000e+00 : f32
    %38 = vector.broadcast %cst_20 : f32 to vector<16x128xf32>
    %39 = arith.maximumf %37, %38 : vector<16x128xf32>
    %c0_21 = arith.constant 0 : index
    %c0_22 = arith.constant 0 : index
    %40 = vector.load %arg7[%c0_21, %c0_22] : memref<16x128xf32, #tpu.memory_space<vmem>>, vector<16x128xf32>
    tpu.vector_store %arg7[%c0_21, %c0_22], %39 {strides = array<i32>} : memref<16x128xf32, #tpu.memory_space<vmem>>, vector<16x128xf32>,
    return
  }
}

</mosaic_0001>

<bundles_post_ra>
// kernel: bottleneck_block_nhwc.1
= control target key start
LH: loop header
LB: loop body
LE: loop exit
PB: predicated region body
PF: predicated region fallthrough
CT: control target
= control target key end

     0   :  { %v494_v0 = vmov 0.0   ;;  %vm495_vm0 = vmmov 0   ;;  %v149_v14 = vlaneseq  ;;  %vm188_vm7 = vcmask 261120   ;;  %s658_s1 = inlined_call_operand.vmem [shape: bf16[128,32], index: 1, kind: input, shape index: {}]   ;;  %s659_s0 = inlined_call_operand.vmem [shape: bf16[16,128], index: 0, kind: input, shape index: {}]   ;;  %s660_s2 = inlined_call_operand.vmem [shape: bf16[96,32], index: 2, kind: input, shape index: {}]   ;;  %s661_s4 = inlined_call_operand.vmem [shape: f32[1,32], index: 4, kind: input, shape index: {}]   ;;  %s662_s3 = inlined_call_operand.vmem [shape: bf16[32,128], index: 3, kind: input, shape index: {}]   ;;  %s663_s5 = inlined_call_operand.vmem [shape: f32[1,32], index: 5, kind: input, shape index: {}]   ;;  %s664_s6 = inlined_call_operand.vmem [shape: f32[1,128], index: 6, kind: input, shape index: {}]   ;;  %s665_s7 = inlined_call_operand.vmem [shape: f32[16,128], index: 7, kind: output, shape index: {}]  }
   0x1   :  { %418 = vmatprep.subr.bf16.mxu0 %v494_v0  ;;  %v476_v1 = vld [vmem:[%s658_s1 + $0x38] sm:$0xff]   ;;  %434 = vmatprep.mubr.msk.bf16.mxu0 %vm495_vm0, %v494_v0  ;;  %v477_v2 = vld [vmem:[%s658_s1 + $0x30] sm:$0xff]   ;;  %v478_v3 = vld [vmem:[%s658_s1 + $0x28] sm:$0xff]   ;;  %vm191_vm8 = vcmask 523264   ;;  %vm250_vm9 = vcmask 785408  }
   0x2   :  { %438 = vmatprep.subr.bf16.mxu1 %v494_v0  ;;  %450 = vmatprep.mubr.msk.bf16.mxu1 %vm495_vm0, %v494_v0  ;;  %v479_v4 = vld [vmem:[%s658_s1 + $0x20] sm:$0xff]   ;;  %v480_v5 = vld [vmem:[%s658_s1 + $0x18] sm:$0xff]   ;;  %v481_v6 = vld [vmem:[%s658_s1 + $0x10] sm:$0xff]   ;;  %v150_v15 = vshrl.u32 %v149_v14, 7 }
   0x3   :  { %419 = vmatpush3.bf16.msra.mxu0 %v476_v1  ;;  %v482_v7 = vld [vmem:[%s658_s1 + $0x8] sm:$0xff]   ;;  %v483_v8 = vld [vmem:[%s658_s1] sm:$0xff]   ;;  %v487_v12 = vld [vmem:[%s660_s2 + $0x18] sm:$0xff]  }
   0x4   :  { %420 = vmatprep.subr.bf16.mxu0 %v494_v0  ;;  %v577_v9 = vld [vmem:[%s659_s0] sm:$0xff]   ;;  %v485_v10 = vld [vmem:[%s660_s2 + $0x28] sm:$0xff]   ;;  %v488_v13 = vld [vmem:[%s660_s2 + $0x10] sm:$0xff]   ;;  %v151_v19 = vadd.s32 8, %v150_v15  ;;  %v152_v23 = vand.u32 7, %v150_v15  ;;  %vm167_vm2 = vcmp.lt.s32.totalorder %v150_v15, 7 }
   0x5   :  { %439 = vmatpush3.bf16.msra.mxu1 %v485_v10  ;;  %v486_v11 = vld [vmem:[%s660_s2 + $0x20] sm:$0xff]   ;;  %v489_v17 = vld [vmem:[%s660_s2 + $0x8] sm:$0xff]   ;;  %vm158_vm3 = vcmp.lt.s32.totalorder %v150_v15, 1  ;;  %v366_v14 = vunpack.c.h.bf16 %v577_v9 }
   0x6   :  { %440 = vmatprep.subr.bf16.mxu1 %v494_v0  ;;  %v377_v16 = vld [vmem:[%s661_s4] ss:$0 sm:$0xff]  ;;  %v153_v26 = vand.u32 7, %v151_v19  ;;  %vm608_vm1 = vcmp.ne.s32.totalorder %v152_v23, 7  ;;  %vm616_vm5 = vcmp.ne.s32.totalorder %v152_v23, 0  ;;  %s497_s4 = smov 64  }
   0x7   :  { %421 = vmatpush3.bf16.msra.mxu0 %v477_v2  ;;  %v490_v22 = vld [vmem:[%s660_s2] sm:$0xff]   ;;  %s496_s2 = smov 32   ;;  %v491_v59 = vld [vmem:[%s662_s3 + $0x8] sm:$0xff]  }
   0x8   :  { %422 = vmatprep.subr.bf16.mxu0 %v494_v0  ;;  %vm612_vm4 = vcmp.ne.s32.totalorder %v153_v26, 7  ;;  %vm620_vm6 = vcmp.ne.s32.totalorder %v153_v26, 0  ;;  %v492_v60 = vld [vmem:[%s662_s3] sm:$0xff]  }
   0x9   :  { %441 = vmatpush3.bf16.msra.mxu1 %v486_v11  ;;  %v387_v61 = vld [vmem:[%s663_s5] ss:$0 sm:$0xff] }
   0xa   :  { %442 = vmatprep.subr.bf16.mxu1 %v494_v0 }
   0xb   :  { %423 = vmatpush3.bf16.msra.mxu0 %v478_v3 }
   0xc   :  { %424 = vmatprep.subr.bf16.mxu0 %v494_v0 }
   0xd   :  { %443 = vmatpush3.bf16.msra.mxu1 %v487_v12 }
   0xe   :  { %444 = vmatprep.subr.bf16.mxu1 %v494_v0 }
   0xf   :  { %425 = vmatpush3.bf16.msra.mxu0 %v479_v4 }
  0x10   :  { %426 = vmatprep.subr.bf16.mxu0 %v494_v0 }
  0x11   :  { %445 = vmatpush3.bf16.msra.mxu1 %v488_v13 }
  0x12   :  { %446 = vmatprep.subr.bf16.mxu1 %v494_v0 }
  0x13   :  { %427 = vmatpush3.bf16.msra.mxu0 %v480_v5 }
  0x14   :  { %428 = vmatprep.subr.bf16.mxu0 %v494_v0 }
  0x15   :  { %447 = vmatpush3.bf16.msra.mxu1 %v489_v17 }
  0x16   :  { %448 = vmatprep.subr.bf16.mxu1 %v494_v0 }
  0x17   :  { %429 = vmatpush3.bf16.msra.mxu0 %v481_v6 }
  0x18   :  { %430 = vmatprep.subr.bf16.mxu0 %v494_v0 }
  0x19   :  { %449 = vmatpush3.bf16.msra.mxu1 %v490_v22 }
  0x1a   :  { %454 = vmatprep.subr.bf16.mxu1 %v494_v0 }
  0x1b   :  { %431 = vmatpush3.bf16.msra.mxu0 %v482_v7 }
  0x1c   :  { %432 = vmatprep.subr.bf16.mxu0 %v494_v0 }
  0x1f   :  { %433 = vmatpush3.bf16.msra.mxu0 %v483_v8  ;;  %v365_v8 = vunpack.c.l.bf16 %v577_v9 }
  0x22   :  { %435 = vmatmul.mubr.bf16.vlgmr.msra.gmra.mxu0 %v577_v9 }
  0xe2   :  { %v140_v18 = vpop.f32.mrf.mxu0 }
  0xe3   :  { %v141_v20 = vadd.f32 %v377_v16, %v140_v18 }
  0xe4   :  { %v436_v21 = vpop.f32.mrf.mxu0 }
  0xe5   :  { %v147_v24 = vmax.f32 %v141_v20, 0.0 }
  0xe6   :  { %v143_v25 = vpop.f32.mrf.mxu0 }
  0xe7   :  { %v144_v27 = vadd.f32 %v377_v16, %v143_v25  ;;  %v156_v31 = vrot.slane %v147_v24, 7  ;;  %v165_v35 = vrot.slane %v147_v24, 1 }
  0xe8   :  { %v437_v28 = vpop.f32.mrf.mxu0 }
  0xe9   :  { %v148_v29 = vmax.f32 %v144_v27, 0.0 }
  0xeb   :  { %v157_v36 = vrot.slane %v148_v29, 7  ;;  %v166_v37 = vrot.slane %v148_v29, 1  ;;  %v466_v38 = vpack.i.bf16 %v148_v29, %v147_v24 }
  0xed   :  { %467 = vrot.lane.b32.xlu0 %v466_v38, %s496_s2  ;;  %v168_v39 = vsel %vm167_vm2, %v165_v35, %v166_v37  ;;  %v169_v40 = vsel %vm167_vm2, %v166_v37, %v165_v35  ;;  %v159_v41 = vsel %vm158_vm3, %v156_v31, %v157_v36  ;;  %v160_v42 = vsel %vm158_vm3, %v157_v36, %v156_v31 }
  0xee   :  { %v170_v43 = vsel %vm608_vm1, %v168_v39, 0.0  ;;  %v171_v44 = vsel %vm612_vm4, %v169_v40, 0.0  ;;  %v161_v45 = vsel %vm616_vm5, %v160_v42, 0.0  ;;  %v162_v46 = vsel %vm620_vm6, %v159_v41, 0.0 }
  0xef   :  { %v471_v47 = vpack.i.bf16 %v171_v44, %v170_v43 }
  0xf1   :  { %472 = vrot.lane.b32.xlu0 %v471_v47, %s497_s4 }
 0x15f   :  { %v468_v48 = vpop.permute.xlu0 %467 }
 0x160   :  { %v470_v49 = vunpack.i.h.bf16 %v468_v48  ;;  %v469_v50 = vunpack.i.l.bf16 %v468_v48 }
 0x162   :  { %v189_v54 = vsel %vm188_vm7, %v161_v45, %v469_v50  ;;  %v190_v55 = vsel %vm188_vm7, %v162_v46, %v470_v49 }
 0x163   :  { %v473_v51 = vpop.permute.xlu0 %472 }
 0x164   :  { %v475_v52 = vunpack.i.h.bf16 %v473_v51  ;;  %v474_v53 = vunpack.i.l.bf16 %v473_v51 }
 0x166   :  { %v192_v56 = vsel %vm191_vm8, %v189_v54, %v474_v53  ;;  %v193_v57 = vsel %vm191_vm8, %v190_v55, %v475_v52 }
 0x167   :  { %v194_v58 = vpack.c.bf16 %v193_v57, %v192_v56 }
 0x169   :  { %451 = vmatmul.mubr.msk.bf16.vlgmr.msra.gmra.mxu1 %vm250_vm9, %v194_v58 }
 0x16a   :  { %458 = vmatprep.mubr.msk.bf16.mxu1 %vm495_vm0, %v494_v0  ;;  %455 = vmatpush3.bf16.msra.mxu1 %v491_v59 }
 0x16b   :  { %456 = vmatprep.subr.bf16.mxu1 %v494_v0  ;;  %v395_v0 = vld [vmem:[%s664_s6] ss:$0 sm:$0xff] }
 0x16e   :  { %457 = vmatpush3.bf16.msra.mxu1 %v492_v60 }
 0x229   :  { %v288_v62 = vpop.f32.mrf.mxu1 }
 0x22a   :  { %v289_v1 = vadd.f32 %v387_v61, %v288_v62 }
 0x22b   :  { %v452_v63 = vpop.f32.mrf.mxu1 }
 0x22c   :  { %v295_v5 = vmax.f32 %v289_v1, 0.0 }
 0x22d   :  { %v291_v2 = vpop.f32.mrf.mxu1 }
 0x22e   :  { %v292_v3 = vadd.f32 %v387_v61, %v291_v2 }
 0x22f   :  { %v453_v4 = vpop.f32.mrf.mxu1 }
 0x230   :  { %v296_v6 = vmax.f32 %v292_v3, 0.0 }
 0x232   :  { %v297_v7 = vpack.c.bf16 %v296_v6, %v295_v5 }
 0x234   :  { %459 = vmatmul.mubr.msk.bf16.vlgmr.msra.gmra.mxu1 %vm188_vm7, %v297_v7 }
 0x2f4   :  { %v358_v10 = vpop.f32.mrf.mxu1 }
 0x2f5   :  { %v359_v11 = vadd.f32 %v395_v0, %v358_v10 }
 0x2f6   :  { %v460_v12 = vpop.f32.mrf.mxu1 }
 0x2f7   :  { %v367_v13 = vadd.f32 %v365_v8, %v359_v11 }
 0x2f8   :  { %v361_v15 = vpop.f32.mrf.mxu1 }
 0x2f9   :  { %v369_v16 = vmax.f32 %v367_v13, 0.0  ;;  %v362_v17 = vadd.f32 %v395_v0, %v361_v15 }
 0x2fa   :  { %v461_v18 = vpop.f32.mrf.mxu1 }
 0x2fb   :  { %371 = vst [vmem:[%s665_s7] sm:$0xff] %v369_v16  ;;  %v368_v19 = vadd.f32 %v366_v14, %v362_v17 }
 0x2fd   :  { %v370_v20 = vmax.f32 %v368_v19, 0.0 }
 0x2ff   :  { %372 = vst [vmem:[%s665_s7 + $0x8] sm:$0xff] %v370_v20 }

</bundles_post_ra>
